<compile_context>
chip_gen: v5e
topology: v5e:2x2
jax: 0.10.0
libtpu: 0.0.40
codegen_flags: <defaults>
</compile_context>

<pallas_src>
import functools
import math

import jax
import jax.numpy as jnp
from jax.experimental import pallas as pl
from jax.experimental.pallas import tpu as pltpu

LANE = 128          # lane width: last-dim granularity for dense, unmasked stores
SUBLANE = 8         # f32 sublane granularity
N_CHUNK = 512       # per-layer output-dim chunk (bounds the live f32 activation)


def _round_up(n, m):
    return ((n + m - 1) // m) * m


def _fused_mlp_kernel(*refs, n_layers):
    """Fused Linear/ReLU stack.  refs = (x, w1, b1, ..., wN, bN, out).

    Activations stay resident in VMEM/vregs for the whole stack.  Each layer's
    matmul is chunked over the output (lane) dimension so the f32 intermediate
    never exceeds (tm, N_CHUNK) before it is ReLU'd + cast to bf16 (hidden
    layers) or stored (final layer).  Chunk boundaries are multiples of 128,
    so final stores are lane-dense unmasked vst.
    """
    x_ref = refs[0]
    o_ref = refs[-1]
    h = x_ref[...].astype(jnp.bfloat16)           # no-op if input already bf16
    for li in range(n_layers):
        w_ref = refs[1 + 2 * li]
        b_ref = refs[2 + 2 * li]
        out_pad = w_ref.shape[1]
        last = li == n_layers - 1
        chunks = []
        for n0 in range(0, out_pad, N_CHUNK):
            n1 = min(n0 + N_CHUNK, out_pad)
            y = jnp.dot(h, w_ref[:, n0:n1], preferred_element_type=jnp.float32)
            y = y + b_ref[:, n0:n1]               # (1, chunk) broadcast
            if last:
                o_ref[:, n0:n1] = y.astype(o_ref.dtype)   # static, 128-aligned store
            else:
                y = jnp.maximum(y, 0.0)           # ReLU between layers only
                chunks.append(y.astype(jnp.bfloat16))
        if not last:
            h = chunks[0] if len(chunks) == 1 else jnp.concatenate(chunks, axis=-1)


def _fused_mlp(x_in, padded_params, d_out_pad, tm, single_buffer_weights):
    """x_in: (b_pad, d_in_pad) f32 or bf16; padded_params: [(w_t bf16, b f32)]."""
    b_pad, d_in_pad = x_in.shape
    n_layers = len(padded_params)

    in_specs = [pl.BlockSpec((tm, d_in_pad), lambda i: (i, 0))]
    flat_args = []
    # Weights/biases are grid-invariant (constant index_map), so one VMEM
    # buffer suffices -> halves the resident weight footprint vs the default
    # double buffering.  Matters most on v7x (64 MiB VMEM).
    const_kwargs = (
        dict(pipeline_mode=pl.Buffered(1)) if single_buffer_weights else {}
    )
    for w_t, b in padded_params:
        in_specs.append(pl.BlockSpec(w_t.shape, lambda i: (0, 0), **const_kwargs))
        in_specs.append(pl.BlockSpec(b.shape, lambda i: (0, 0), **const_kwargs))
        flat_args.extend((w_t, b))

    # Explicit VMEM budget: resident weights + double-buffered in/out tiles +
    # activation scratch + headroom.  Default scoped limits (16/32 MiB) sit far
    # below physical and would gate realistic layer widths.  Cap at 64 MiB so
    # the request is always legal on v7x as well as v5e/v6e.
    # (If a stack's weights approach that cap, split the fusion at a layer
    #  boundary into two pallas_calls — not needed at these sizes.)
    weight_bytes = sum(
        w.size * w.dtype.itemsize + b.size * b.dtype.itemsize
        for w, b in padded_params)
    if not single_buffer_weights:
        weight_bytes *= 2
    max_width = max(w.shape[1] for w, _ in padded_params)
    io_bytes = 2 * tm * d_in_pad * x_in.dtype.itemsize + 2 * tm * d_out_pad * 4
    act_bytes = tm * (2 * max_width + 4 * min(N_CHUNK, max_width))
    budget = weight_bytes + io_bytes + act_bytes + (8 << 20)
    vmem_limit = int(min(max(budget, 32 << 20), 64 << 20))

    kernel = functools.partial(_fused_mlp_kernel, n_layers=n_layers)
    return pl.pallas_call(
        kernel,
        out_shape=jax.ShapeDtypeStruct((b_pad, d_out_pad), jnp.float32),
        grid=(b_pad // tm,),
        in_specs=in_specs,
        out_specs=pl.BlockSpec((tm, d_out_pad), lambda i: (i, 0)),
        compiler_params=pltpu.CompilerParams(
            # Batch tiles are independent -> v7x's 2 TensorCores split the
            # grid; neutral on single-TC v5e/v6e.
            dimension_semantics=("parallel",),
            vmem_limit_bytes=vmem_limit),
    )(x_in, *flat_args)


def init_mlp_params(sizes, key):
    """nn.Linear default init: U(+/- 1/sqrt(fan_in)).  PyTorch layout, f32."""
    params = []
    for i in range(len(sizes) - 1):
        fan_in, fan_out = sizes[i], sizes[i + 1]
        key, kw, kb = jax.random.split(key, 3)
        bound = 1.0 / math.sqrt(fan_in)
        w = jax.random.uniform(kw, (fan_out, fan_in), jnp.float32, -bound, bound)
        b = jax.random.uniform(kb, (fan_out,), jnp.float32, -bound, bound)
        params.append((w, b))
    return params


def prepare_params(params):
    """Transpose to (in, out), zero-pad both dims to multiples of 128, cast
    weights to bf16 (biases stay f32; accumulation is f32).  Zero padding is
    exact: padded input columns are zero, padded output columns get 0 weight
    and 0 bias, so ReLU keeps them zero into the next (zero-padded) layer.
    (128 alignment; 256 would fill a full v6e/v7x MXU pass but only pays off
    when MXU-bound and it inflates the VMEM weight footprint.)"""
    padded = []
    for w, b in params:
        fan_out, fan_in = w.shape
        in_pad = _round_up(fan_in, LANE)
        out_pad = _round_up(fan_out, LANE)
        w_t = jnp.zeros((in_pad, out_pad), jnp.float32).at[:fan_in, :fan_out].set(w.T)
        b_p = jnp.zeros((1, out_pad), jnp.float32).at[0, :fan_out].set(b)
        padded.append((w_t.astype(jnp.bfloat16), b_p))
    return padded


def _choose_tm(B):
    """Pick the batch tile (tm) and padded batch (b_pad).

    Small batches (<=128) use one full-array block (exempt from the (8,128)
    rule) -> no batch padding at all.  Large batches prefer bigger tiles
    (fewer ~0.35us grid steps, fills the 256-row MXU on v6e/v7x), with an even
    grid-step count so v7x's two TensorCores split the parallel axis evenly.
    """
    if B <= LANE:
        return B, B                                 # single grid step
    for tm in (512, 256, 128):                      # even grid first (v7x balance)
        if B % tm == 0 and (B // tm) % 2 == 0:
            return tm, B
    for tm in (512, 256, 128):
        if B % tm == 0:
            return tm, B
    return LANE, _round_up(B, LANE)                 # fallback: pad batch


def mod_forward(x, padded_params, out_dim):
    """Flatten (same as nn.Flatten) + one fused Pallas MLP call."""
    B = x.shape[0]
    xf = x.reshape(B, -1)                           # (B, C*H*W), row-major
    d_in = xf.shape[1]
    d_in_pad = padded_params[0][0].shape[0]
    d_out_pad = padded_params[-1][0].shape[1]

    tm, b_pad = _choose_tm(B)

    if d_in == d_in_pad and b_pad == B:
        # No wrapper-side pad/cast HBM round trip: feed the reshaped f32 input
        # directly, the kernel casts to bf16 in-VMEM.
        x_in = xf
    else:
        # Fallback: zero-pad (mathematically inert) into a bf16 staging array.
        x_in = jnp.zeros((b_pad, d_in_pad), jnp.bfloat16)
        x_in = x_in.at[:B, :d_in].set(xf.astype(jnp.bfloat16))

    try:
        y_pad = _fused_mlp(x_in, padded_params, d_out_pad, tm,
                           single_buffer_weights=True)
    except Exception:
        # If this jax build rejects pipeline_mode=pl.Buffered(1), fall back to
        # default double buffering (identical numerics, larger weight VMEM).
        y_pad = _fused_mlp(x_in, padded_params, d_out_pad, tm,
                           single_buffer_weights=False)
    return y_pad[:B, :out_dim]                      # strip batch + lane padding


if __name__ == "__main__":
    # Small shapes: x is (B=2, C=4, H=8, W=8) -> flattened dim 256.
    sizes = [256, 128, 64]                          # Linear(256,128), ReLU, Linear(128,64)

    key = jax.random.PRNGKey(0)
    key, kx = jax.random.split(key)
    x = jax.random.normal(kx, (2, 4, 8, 8), dtype=jnp.float32)

    params_f32 = init_mlp_params(sizes, key)
    padded_params = prepare_params(params_f32)

    logits = mod_forward(x, padded_params, out_dim=sizes[-1])
    jax.block_until_ready(logits)
    assert logits.shape == (2, sizes[-1])

    # Reference 1: same bf16-operand / f32-accumulate numerics, plain JAX.
    h = x.reshape(x.shape[0], -1).astype(jnp.bfloat16)
    for li, (w, b) in enumerate(params_f32):
        h = jnp.dot(h, w.T.astype(jnp.bfloat16),
                    preferred_element_type=jnp.float32) + b[None, :]
        if li < len(params_f32) - 1:
            h = jnp.maximum(h, 0.0).astype(jnp.bfloat16)
    assert jnp.allclose(logits, h, atol=1e-3, rtol=1e-3)

    # Reference 2: pure f32 module semantics (loose, bf16-level tolerance).
    hf = x.reshape(x.shape[0], -1)
    for li, (w, b) in enumerate(params_f32):
        hf = hf @ w.T + b[None, :]
        if li < len(params_f32) - 1:
            hf = jnp.maximum(hf, 0.0)
    assert jnp.allclose(logits, hf, atol=5e-2, rtol=5e-2)

    print("KERNEL_OK")
</pallas_src>

<mosaic_0001>
module attributes {stable_mosaic.version = 11 : i64} {
  func.func @_fused_mlp_kernel(%arg0: i32, %arg1: memref<2x256xf32, #tpu.memory_space<vmem>>, %arg2: memref<256x128xbf16, #tpu.memory_space<vmem>>, %arg3: memref<1x128xf32, #tpu.memory_space<vmem>>, %arg4: memref<128x128xbf16, #tpu.memory_space<vmem>>, %arg5: memref<1x128xf32, #tpu.memory_space<vmem>>, %arg6: memref<2x128xf32, #tpu.memory_space<vmem>>) attributes {dimension_semantics = [#tpu.dimension_semantics<parallel>], iteration_bounds = array<i64: 1>, scalar_prefetch = 0 : i64, scratch_operands = 0 : i64, tpu.core_type = #tpu.core_type<tc>, window_params = [{transform_indices = @transform_0, window_bounds = array<i64: 2, 256>}, {pipeline_mode = #tpu.pipeline_mode<synchronous>, transform_indices = @transform_1, window_bounds = array<i64: 256, 128>}, {pipeline_mode = #tpu.pipeline_mode<synchronous>, transform_indices = @transform_2, window_bounds = array<i64: 1, 128>}, {pipeline_mode = #tpu.pipeline_mode<synchronous>, transform_indices = @transform_3, window_bounds = array<i64: 128, 128>}, {pipeline_mode = #tpu.pipeline_mode<synchronous>, transform_indices = @transform_4, window_bounds = array<i64: 1, 128>}, {transform_indices = @transform_5, window_bounds = array<i64: 2, 128>}]} {
    %c0 = arith.constant 0 : index
    %c0_0 = arith.constant 0 : index
    %0 = vector.load %arg1[%c0, %c0_0] : memref<2x256xf32, #tpu.memory_space<vmem>>, vector<2x256xf32>
    %1 = arith.truncf %0 : vector<2x256xf32> to vector<2x256xbf16>
    %c0_1 = arith.constant 0 : index
    %c0_2 = arith.constant 0 : index
    %2 = vector.load %arg2[%c0_1, %c0_2] : memref<256x128xbf16, #tpu.memory_space<vmem>>, vector<256x128xbf16>
    %cst = arith.constant dense<0.000000e+00> : vector<2x128xf32>
    %3 = tpu.matmul %1, %2, %cst {dimension_numbers = #tpu.dot_dimension_numbers<[1], [0], [0], [1], [0, 0, 1, 1], [], []>} : vector<2x256xbf16>, vector<256x128xbf16>, vector<2x128xf32> -> vector<2x128xf32>
    %c0_3 = arith.constant 0 : index
    %c0_4 = arith.constant 0 : index
    %4 = vector.load %arg3[%c0_3, %c0_4] : memref<1x128xf32, #tpu.memory_space<vmem>>, vector<1x128xf32>
    %5 = vector.broadcast %4 : vector<1x128xf32> to vector<2x128xf32>
    %6 = arith.addf %3, %5 : vector<2x128xf32>
    %cst_5 = arith.constant 0.000000e+00 : f32
    %7 = vector.broadcast %cst_5 : f32 to vector<2x128xf32>
    %8 = arith.maximumf %6, %7 : vector<2x128xf32>
    %9 = arith.truncf %8 : vector<2x128xf32> to vector<2x128xbf16>
    %c0_6 = arith.constant 0 : index
    %c0_7 = arith.constant 0 : index
    %10 = vector.load %arg4[%c0_6, %c0_7] : memref<128x128xbf16, #tpu.memory_space<vmem>>, vector<128x128xbf16>
    %cst_8 = arith.constant dense<0.000000e+00> : vector<2x128xf32>
    %11 = tpu.matmul %9, %10, %cst_8 {dimension_numbers = #tpu.dot_dimension_numbers<[1], [0], [0], [1], [0, 0, 1, 1], [], []>} : vector<2x128xbf16>, vector<128x128xbf16>, vector<2x128xf32> -> vector<2x128xf32>
    %c0_9 = arith.constant 0 : index
    %c0_10 = arith.constant 0 : index
    %12 = vector.load %arg5[%c0_9, %c0_10] : memref<1x128xf32, #tpu.memory_space<vmem>>, vector<1x128xf32>
    %13 = vector.broadcast %12 : vector<1x128xf32> to vector<2x128xf32>
    %14 = arith.addf %11, %13 : vector<2x128xf32>
    %c0_11 = arith.constant 0 : index
    %c0_12 = arith.constant 0 : index
    %15 = vector.load %arg6[%c0_11, %c0_12] : memref<2x128xf32, #tpu.memory_space<vmem>>, vector<2x128xf32>
    tpu.vector_store %arg6[%c0_11, %c0_12], %14 {strides = array<i32>} : memref<2x128xf32, #tpu.memory_space<vmem>>, vector<2x128xf32>,
    return
  }
  func.func @transform_0(%arg0: i32) -> (i32, i32) {
    %c0_i32 = arith.constant 0 : i32
    %c0_i32_0 = arith.constant 0 : i32
    return %arg0, %c0_i32 : i32, i32
  }
  func.func @transform_1(%arg0: i32) -> (i32, i32) {
    %c0_i32 = arith.constant 0 : i32
    %c0_i32_0 = arith.constant 0 : i32
    %c0_i32_1 = arith.constant 0 : i32
    return %c0_i32, %c0_i32_0 : i32, i32
  }
  func.func @transform_2(%arg0: i32) -> (i32, i32) {
    %c0_i32 = arith.constant 0 : i32
    %c0_i32_0 = arith.constant 0 : i32
    %c0_i32_1 = arith.constant 0 : i32
    return %c0_i32, %c0_i32_0 : i32, i32
  }
  func.func @transform_3(%arg0: i32) -> (i32, i32) {
    %c0_i32 = arith.constant 0 : i32
    %c0_i32_0 = arith.constant 0 : i32
    %c0_i32_1 = arith.constant 0 : i32
    return %c0_i32, %c0_i32_0 : i32, i32
  }
  func.func @transform_4(%arg0: i32) -> (i32, i32) {
    %c0_i32 = arith.constant 0 : i32
    %c0_i32_0 = arith.constant 0 : i32
    %c0_i32_1 = arith.constant 0 : i32
    return %c0_i32, %c0_i32_0 : i32, i32
  }
  func.func @transform_5(%arg0: i32) -> (i32, i32) {
    %c0_i32 = arith.constant 0 : i32
    %c0_i32_0 = arith.constant 0 : i32
    return %arg0, %c0_i32 : i32, i32
  }
}

module attributes {stable_mosaic.version = 11 : i64} {
  func.func @_fused_mlp_kernel(%arg0: i32, %arg1: memref<2x256xf32, #tpu.memory_space<vmem>>, %arg2: memref<256x128xbf16, #tpu.memory_space<vmem>>, %arg3: memref<1x128xf32, #tpu.memory_space<vmem>>, %arg4: memref<128x128xbf16, #tpu.memory_space<vmem>>, %arg5: memref<1x128xf32, #tpu.memory_space<vmem>>, %arg6: memref<2x128xf32, #tpu.memory_space<vmem>>) attributes {dimension_semantics = [#tpu.dimension_semantics<parallel>], iteration_bounds = array<i64: 1>, scalar_prefetch = 0 : i64, scratch_operands = 0 : i64, tpu.core_type = #tpu.core_type<tc>, window_params = [{transform_indices = @transform_0, window_bounds = array<i64: 2, 256>}, {pipeline_mode = #tpu.pipeline_mode<synchronous>, transform_indices = @transform_1, window_bounds = array<i64: 256, 128>}, {pipeline_mode = #tpu.pipeline_mode<synchronous>, transform_indices = @transform_2, window_bounds = array<i64: 1, 128>}, {pipeline_mode = #tpu.pipeline_mode<synchronous>, transform_indices = @transform_3, window_bounds = array<i64: 128, 128>}, {pipeline_mode = #tpu.pipeline_mode<synchronous>, transform_indices = @transform_4, window_bounds = array<i64: 1, 128>}, {transform_indices = @transform_5, window_bounds = array<i64: 2, 128>}]} {
    %c0 = arith.constant 0 : index
    %c0_0 = arith.constant 0 : index
    %0 = vector.load %arg1[%c0, %c0_0] : memref<2x256xf32, #tpu.memory_space<vmem>>, vector<2x256xf32>
    %1 = arith.truncf %0 : vector<2x256xf32> to vector<2x256xbf16>
    %c0_1 = arith.constant 0 : index
    %c0_2 = arith.constant 0 : index
    %2 = vector.load %arg2[%c0_1, %c0_2] : memref<256x128xbf16, #tpu.memory_space<vmem>>, vector<256x128xbf16>
    %cst = arith.constant dense<0.000000e+00> : vector<2x128xf32>
    %3 = tpu.matmul %1, %2, %cst {dimension_numbers = #tpu.dot_dimension_numbers<[1], [0], [0], [1], [0, 0, 1, 1], [], []>} : vector<2x256xbf16>, vector<256x128xbf16>, vector<2x128xf32> -> vector<2x128xf32>
    %c0_3 = arith.constant 0 : index
    %c0_4 = arith.constant 0 : index
    %4 = vector.load %arg3[%c0_3, %c0_4] : memref<1x128xf32, #tpu.memory_space<vmem>>, vector<1x128xf32>
    %5 = vector.broadcast %4 : vector<1x128xf32> to vector<2x128xf32>
    %6 = arith.addf %3, %5 : vector<2x128xf32>
    %cst_5 = arith.constant 0.000000e+00 : f32
    %7 = vector.broadcast %cst_5 : f32 to vector<2x128xf32>
    %8 = arith.maximumf %6, %7 : vector<2x128xf32>
    %9 = arith.truncf %8 : vector<2x128xf32> to vector<2x128xbf16>
    %c0_6 = arith.constant 0 : index
    %c0_7 = arith.constant 0 : index
    %10 = vector.load %arg4[%c0_6, %c0_7] : memref<128x128xbf16, #tpu.memory_space<vmem>>, vector<128x128xbf16>
    %cst_8 = arith.constant dense<0.000000e+00> : vector<2x128xf32>
    %11 = tpu.matmul %9, %10, %cst_8 {dimension_numbers = #tpu.dot_dimension_numbers<[1], [0], [0], [1], [0, 0, 1, 1], [], []>} : vector<2x128xbf16>, vector<128x128xbf16>, vector<2x128xf32> -> vector<2x128xf32>
    %c0_9 = arith.constant 0 : index
    %c0_10 = arith.constant 0 : index
    %12 = vector.load %arg5[%c0_9, %c0_10] : memref<1x128xf32, #tpu.memory_space<vmem>>, vector<1x128xf32>
    %13 = vector.broadcast %12 : vector<1x128xf32> to vector<2x128xf32>
    %14 = arith.addf %11, %13 : vector<2x128xf32>
    %c0_11 = arith.constant 0 : index
    %c0_12 = arith.constant 0 : index
    %15 = vector.load %arg6[%c0_11, %c0_12] : memref<2x128xf32, #tpu.memory_space<vmem>>, vector<2x128xf32>
    tpu.vector_store %arg6[%c0_11, %c0_12], %14 {strides = array<i32>} : memref<2x128xf32, #tpu.memory_space<vmem>>, vector<2x128xf32>,
    return
  }
  func.func @transform_0(%arg0: i32) -> (i32, i32) {
    %c0_i32 = arith.constant 0 : i32
    %c0_i32_0 = arith.constant 0 : i32
    return %arg0, %c0_i32 : i32, i32
  }
  func.func @transform_1(%arg0: i32) -> (i32, i32) {
    %c0_i32 = arith.constant 0 : i32
    %c0_i32_0 = arith.constant 0 : i32
    %c0_i32_1 = arith.constant 0 : i32
    return %c0_i32, %c0_i32_0 : i32, i32
  }
  func.func @transform_2(%arg0: i32) -> (i32, i32) {
    %c0_i32 = arith.constant 0 : i32
    %c0_i32_0 = arith.constant 0 : i32
    %c0_i32_1 = arith.constant 0 : i32
    return %c0_i32, %c0_i32_0 : i32, i32
  }
  func.func @transform_3(%arg0: i32) -> (i32, i32) {
    %c0_i32 = arith.constant 0 : i32
    %c0_i32_0 = arith.constant 0 : i32
    %c0_i32_1 = arith.constant 0 : i32
    return %c0_i32, %c0_i32_0 : i32, i32
  }
  func.func @transform_4(%arg0: i32) -> (i32, i32) {
    %c0_i32 = arith.constant 0 : i32
    %c0_i32_0 = arith.constant 0 : i32
    %c0_i32_1 = arith.constant 0 : i32
    return %c0_i32, %c0_i32_0 : i32, i32
  }
  func.func @transform_5(%arg0: i32) -> (i32, i32) {
    %c0_i32 = arith.constant 0 : i32
    %c0_i32_0 = arith.constant 0 : i32
    return %arg0, %c0_i32 : i32, i32
  }
}

</mosaic_0001>

<bundles_post_ra>
// kernel: tpu_custom_call.1
= control target key start
LH: loop header
LB: loop body
LE: loop exit
PB: predicated region body
PF: predicated region fallthrough
CT: control target
= control target key end

     0   :  { %10 = vsyncpa [#allocation3], 0  ;;  %s619_s0 = inlined_call_operand.hbm [shape: f32[2,256], index: 0, kind: input, shape index: {}]   ;;  %s620_s1 = inlined_call_operand.hbm [shape: bf16[256,128], index: 1, kind: input, shape index: {}]   ;;  %s621_s2 = inlined_call_operand.vmem [shape: f32[1,128], index: 2, kind: input, shape index: {}]   ;;  %s622_s3 = inlined_call_operand.hbm [shape: bf16[128,128], index: 3, kind: input, shape index: {}]   ;;  %s623_s4 = inlined_call_operand.vmem [shape: f32[1,128], index: 4, kind: input, shape index: {}]   ;;  %s624_s5 = inlined_call_operand.hbm [shape: f32[2,128], index: 5, kind: output, shape index: {}]  }
   0x1   :  { %11 = vsyncpa [#allocation6], 0  ;;  %s28_s20 = sshll.u32 %s620_s1, 4  ;;  %s29_s20 = int_to_ptr.hbm [resolvable:$true] %s28_s20 }
   0x2   :  { %12 = vsyncpa [#allocation4], 0  ;;  %s565_s21 = smov [#allocation5]   ;;  %s18_s25 = sshll.u32 %s619_s0, 4  ;;  %s19_s25 = int_to_ptr.hbm [resolvable:$true] %s18_s25 }
   0x3   :  { %s30_s22 = sshll.u32 %s565_s21, 4  ;;  %s566_s26 = smov 64   ;;  %s31_s22 = int_to_ptr.vmem [resolvable:$true] %s30_s22 }
   0x4   :  { %s567_s27 = smov 4   ;;  %s568_s28 = smov [#allocation2]  }
   0x5   :  { %36 = dma.hbm_to_vmem [thread:$0]  %s29_s20, 2048, %s31_s22, [#allocation6], %s566_s26, %s566_s26, %s567_s27  }
   0x6   :  { %s20_s29 = sshll.u32 %s568_s28, 4  ;;  %s43_s7 = sshll.u32 %s622_s3, 4  ;;  %s21_s29 = int_to_ptr.vmem [resolvable:$true] %s20_s29  ;;  %s44_s7 = int_to_ptr.hbm [resolvable:$true] %s43_s7 }
   0x7   :  { %23 = dma.hbm_to_vmem [thread:$0]  %s19_s25, 64, %s21_s29, [#allocation3]  }
   0x8   :  { %s569_s1 = smov [#allocation7]  }
   0x9   :  { %s45_s8 = sshll.u32 %s569_s1, 4  ;;  %s46_s8 = int_to_ptr.vmem [resolvable:$true] %s45_s8 }
   0xa   :  { %51 = dma.hbm_to_vmem [thread:$0]  %s44_s7, 1024, %s46_s8, [#allocation6], %s566_s26, %s566_s26, %s567_s27  }
   0xb   :  { %559 = dma.done.wait [#allocation3], 64  }
   0xc   :  { %560 = vsyncadd [#allocation3], 4294967232 }
   0xd   :  { %561 = dma.done.wait [#allocation6], 3072  }
   0xe   :  { %562 = vsyncadd [#allocation6], 4294964224  ;;  %v438_v0 = vld [vmem:[#allocation5 + $0x38] sm:$0xff]  ;;  %v437_v2 = vld [vmem:[#allocation5 + $0x30] sm:$0xff]  ;;  %s570_s11 = smov [#allocation8]   ;;  %s324_s15 = sshll.u32 %s624_s5, 4  ;;  %s325_s15 = int_to_ptr.hbm [resolvable:$true] %s324_s15 }
   0xf   :  { %v446_v1 = vld [vmem:[#allocation5 + $0x78] sm:$0xff]  ;;  %207 = vmatpush.bf16.msra.mxu0 %v438_v0  ;;  %v445_v3 = vld [vmem:[#allocation5 + $0x70] sm:$0xff]  ;;  %v436_v6 = vld [vmem:[#allocation5 + $0x28] sm:$0xff]  ;;  %s322_s12 = sshll.u32 %s570_s11, 4  ;;  %s323_s12 = int_to_ptr.vmem [resolvable:$true] %s322_s12 }
  0x10   :  { %220 = vmatpush.bf16.msra.mxu1 %v446_v1  ;;  %v66_v4 = vld [vmem:[#allocation2] sm:$0xf]  ;;  %v444_v7 = vld [vmem:[#allocation5 + $0x68] sm:$0xff]  ;;  %v453_v8 = vld [vmem:[#allocation7 + $0x30] sm:$0xff] }
  0x11   :  { %v454_v5 = vld [vmem:[#allocation7 + $0x38] sm:$0xff]  ;;  %68 = vst [vmem:[#allocation1] ss:$4 sm:$0xff] %v66_v4  ;;  %v435_v9 = vld [vmem:[#allocation5 + $0x20] sm:$0xff]  ;;  %v452_v11 = vld [vmem:[#allocation7 + $0x28] sm:$0xff] }
  0x12   :  { %303 = vmatpush.bf16.msra.mxu2 %v454_v5  ;;  %v443_v10 = vld [vmem:[#allocation5 + $0x60] sm:$0xff]  ;;  %v434_v12 = vld [vmem:[#allocation5 + $0x18] sm:$0xff]  ;;  %v433_v15 = vld [vmem:[#allocation5 + $0x10] sm:$0xff] }
  0x13   :  { %208 = vmatpush.bf16.msra.mxu0 %v437_v2  ;;  %v442_v13 = vld [vmem:[#allocation5 + $0x58] sm:$0xff]  ;;  %v451_v14 = vld [vmem:[#allocation7 + $0x20] sm:$0xff]  ;;  %v441_v16 = vld [vmem:[#allocation5 + $0x50] sm:$0xff] }
  0x14   :  { %221 = vmatpush.bf16.msra.mxu1 %v445_v3  ;;  %v450_v17 = vld [vmem:[#allocation7 + $0x18] sm:$0xff]  ;;  %v432_v18 = vld [vmem:[#allocation5 + $0x8] sm:$0xff]  ;;  %v449_v20 = vld [vmem:[#allocation7 + $0x10] sm:$0xff] }
  0x15   :  { %v440_v19 = vld [vmem:[#allocation5 + $0x48] sm:$0xff]  ;;  %v431_v21 = vld [vmem:[#allocation5] sm:$0xff]  ;;  %v461_v29 = vld [vmem:[%s621_s2] ss:$0 sm:$0xff] }
  0x16   :  { %304 = vmatpush.bf16.msra.mxu2 %v453_v8  ;;  %v439_v22 = vld [vmem:[#allocation5 + $0x40] sm:$0xff]  ;;  %v448_v27 = vld [vmem:[#allocation7 + $0x8] sm:$0xff]  ;;  %v462_v38 = vld [vmem:[%s623_s4] ss:$0 sm:$0xff] }
  0x17   :  { %209 = vmatpush.bf16.msra.mxu0 %v436_v6  ;;  %v447_v28 = vld [vmem:[#allocation7] sm:$0xff] }
  0x18   :  { %222 = vmatpush.bf16.msra.mxu1 %v444_v7  ;;  %v69_v23 = vld.sshfl [vmem:[#allocation1] sm:$0xff pattern:$0x73625140]  ;;  %v70_v24 = vld.sshfl [vmem:[#allocation1 + $0x8] sm:$0xff pattern:$0x73625140] }
  0x19   :  { %v73_v25 = vpack.c.bf16 %v69_v23, %v69_v23  ;;  %v74_v26 = vpack.c.bf16 %v70_v24, %v70_v24 }
  0x1a   :  { %305 = vmatpush.bf16.msra.mxu2 %v452_v11 }
  0x1b   :  { %210 = vmatpush.bf16.msra.mxu0 %v435_v9 }
  0x1c   :  { %223 = vmatpush.bf16.msra.mxu1 %v443_v10 }
  0x1e   :  { %306 = vmatpush.bf16.msra.mxu2 %v451_v14 }
  0x1f   :  { %211 = vmatpush.bf16.msra.mxu0 %v434_v12 }
  0x20   :  { %224 = vmatpush.bf16.msra.mxu1 %v442_v13 }
  0x22   :  { %307 = vmatpush.bf16.msra.mxu2 %v450_v17 }
  0x23   :  { %212 = vmatpush.bf16.msra.mxu0 %v433_v15 }
  0x24   :  { %225 = vmatpush.bf16.msra.mxu1 %v441_v16 }
  0x26   :  { %308 = vmatpush.bf16.msra.mxu2 %v449_v20 }
  0x27   :  { %213 = vmatpush.bf16.msra.mxu0 %v432_v18 }
  0x28   :  { %226 = vmatpush.bf16.msra.mxu1 %v440_v19 }
  0x2a   :  { %309 = vmatpush.bf16.msra.mxu2 %v448_v27 }
  0x2b   :  { %214 = vmatpush.bf16.msra.mxu0 %v431_v21 }
  0x2c   :  { %227 = vmatpush.bf16.msra.mxu1 %v439_v22 }
  0x2e   :  { %215 = vmatmul.bf16.vlgmr.msra.gmra.mxu0 %v73_v25  ;;  %310 = vmatpush.bf16.msra.mxu2 %v447_v28 }
  0x2f   :  { %228 = vmatmul.bf16.vlgmr.msra.gmra.mxu1 %v74_v26 }
  0xab   :  { %v216_v30 = vpop.f32.mrf.mxu0 }
  0xac   :  { %v229_v31 = vpop.f32.mrf.mxu1  ;;  %v217_v32 = vadd.f32 %v461_v29, %v216_v30 }
  0xae   :  { %v230_v33 = vadd.f32 %v229_v31, %v217_v32 }
  0xb0   :  { %v233_v34 = vmax.f32 %v230_v33, 0.0 }
  0xb2   :  { %v234_v35 = vpack.c.bf16 %v233_v34, %v233_v34 }
  0xb3   :  { %v218_v36 = vpop.f32.mrf.mxu0 }
  0xb4   :  { %v231_v37 = vpop.f32.mrf.mxu1  ;;  %311 = vmatmul.bf16.vlgmr.msra.gmra.mxu2 %v234_v35 }
 0x137   :  { %v312_v39 = vpop.f32.mrf.mxu2 }
 0x138   :  { %v313_v40 = vadd.f32 %v462_v38, %v312_v39 }
 0x13a   :  { %316 = vst [vmem:[#allocation8] sm:$0x3] %v313_v40 }
 0x13b   :  { %327 = dma.vmem_to_hbm [thread:$0]  %s323_s12, 32, %s325_s15, [#allocation4]  }
 0x13f   :  { %v314_v41 = vpop.f32.mrf.mxu2 }
 0x140   :  { %563 = dma.done.wait [#allocation4], 32  }
 0x141   :  { %564 = vsyncadd [#allocation4], 4294967264 }
 0x142   :  { %332 = vsyncpa [#allocation3], 1 }
 0x143   :  { %333 = vsyncpa [#allocation6], 1 }
 0x144   :  { %334 = vsyncpa [#allocation4], 1 }

// kernel: tpu_custom_call.1
= control target key start
LH: loop header
LB: loop body
LE: loop exit
PB: predicated region body
PF: predicated region fallthrough
CT: control target
= control target key end

     0   :  { %10 = vsyncpa [#allocation3], 0  ;;  %s619_s0 = inlined_call_operand.hbm [shape: f32[2,256], index: 0, kind: input, shape index: {}]   ;;  %s620_s1 = inlined_call_operand.hbm [shape: bf16[256,128], index: 1, kind: input, shape index: {}]   ;;  %s621_s2 = inlined_call_operand.vmem [shape: f32[1,128], index: 2, kind: input, shape index: {}]   ;;  %s622_s3 = inlined_call_operand.hbm [shape: bf16[128,128], index: 3, kind: input, shape index: {}]   ;;  %s623_s4 = inlined_call_operand.vmem [shape: f32[1,128], index: 4, kind: input, shape index: {}]   ;;  %s624_s5 = inlined_call_operand.hbm [shape: f32[2,128], index: 5, kind: output, shape index: {}]  }
   0x1   :  { %11 = vsyncpa [#allocation6], 0  ;;  %s28_s20 = sshll.u32 %s620_s1, 4  ;;  %s29_s20 = int_to_ptr.hbm [resolvable:$true] %s28_s20 }
   0x2   :  { %12 = vsyncpa [#allocation4], 0  ;;  %s565_s21 = smov [#allocation5]   ;;  %s18_s25 = sshll.u32 %s619_s0, 4  ;;  %s19_s25 = int_to_ptr.hbm [resolvable:$true] %s18_s25 }
   0x3   :  { %s30_s22 = sshll.u32 %s565_s21, 4  ;;  %s566_s26 = smov 64   ;;  %s31_s22 = int_to_ptr.vmem [resolvable:$true] %s30_s22 }
   0x4   :  { %s567_s27 = smov 4   ;;  %s568_s28 = smov [#allocation2]  }
   0x5   :  { %36 = dma.hbm_to_vmem [thread:$0]  %s29_s20, 2048, %s31_s22, [#allocation6], %s566_s26, %s566_s26, %s567_s27  }
   0x6   :  { %s20_s29 = sshll.u32 %s568_s28, 4  ;;  %s43_s7 = sshll.u32 %s622_s3, 4  ;;  %s21_s29 = int_to_ptr.vmem [resolvable:$true] %s20_s29  ;;  %s44_s7 = int_to_ptr.hbm [resolvable:$true] %s43_s7 }
   0x7   :  { %23 = dma.hbm_to_vmem [thread:$0]  %s19_s25, 64, %s21_s29, [#allocation3]  }
   0x8   :  { %s569_s1 = smov [#allocation7]  }
   0x9   :  { %s45_s8 = sshll.u32 %s569_s1, 4  ;;  %s46_s8 = int_to_ptr.vmem [resolvable:$true] %s45_s8 }
   0xa   :  { %51 = dma.hbm_to_vmem [thread:$0]  %s44_s7, 1024, %s46_s8, [#allocation6], %s566_s26, %s566_s26, %s567_s27  }
   0xb   :  { %559 = dma.done.wait [#allocation3], 64  }
   0xc   :  { %560 = vsyncadd [#allocation3], 4294967232 }
   0xd   :  { %561 = dma.done.wait [#allocation6], 3072  }
   0xe   :  { %562 = vsyncadd [#allocation6], 4294964224  ;;  %v438_v0 = vld [vmem:[#allocation5 + $0x38] sm:$0xff]  ;;  %v437_v2 = vld [vmem:[#allocation5 + $0x30] sm:$0xff]  ;;  %s570_s11 = smov [#allocation8]   ;;  %s324_s15 = sshll.u32 %s624_s5, 4  ;;  %s325_s15 = int_to_ptr.hbm [resolvable:$true] %s324_s15 }
   0xf   :  { %v446_v1 = vld [vmem:[#allocation5 + $0x78] sm:$0xff]  ;;  %207 = vmatpush.bf16.msra.mxu0 %v438_v0  ;;  %v445_v3 = vld [vmem:[#allocation5 + $0x70] sm:$0xff]  ;;  %v436_v6 = vld [vmem:[#allocation5 + $0x28] sm:$0xff]  ;;  %s322_s12 = sshll.u32 %s570_s11, 4  ;;  %s323_s12 = int_to_ptr.vmem [resolvable:$true] %s322_s12 }
  0x10   :  { %220 = vmatpush.bf16.msra.mxu1 %v446_v1  ;;  %v66_v4 = vld [vmem:[#allocation2] sm:$0xf]  ;;  %v444_v7 = vld [vmem:[#allocation5 + $0x68] sm:$0xff]  ;;  %v453_v8 = vld [vmem:[#allocation7 + $0x30] sm:$0xff] }
  0x11   :  { %v454_v5 = vld [vmem:[#allocation7 + $0x38] sm:$0xff]  ;;  %68 = vst [vmem:[#allocation1] ss:$4 sm:$0xff] %v66_v4  ;;  %v435_v9 = vld [vmem:[#allocation5 + $0x20] sm:$0xff]  ;;  %v452_v11 = vld [vmem:[#allocation7 + $0x28] sm:$0xff] }
  0x12   :  { %303 = vmatpush.bf16.msra.mxu2 %v454_v5  ;;  %v443_v10 = vld [vmem:[#allocation5 + $0x60] sm:$0xff]  ;;  %v434_v12 = vld [vmem:[#allocation5 + $0x18] sm:$0xff]  ;;  %v433_v15 = vld [vmem:[#allocation5 + $0x10] sm:$0xff] }
  0x13   :  { %208 = vmatpush.bf16.msra.mxu0 %v437_v2  ;;  %v442_v13 = vld [vmem:[#allocation5 + $0x58] sm:$0xff]  ;;  %v451_v14 = vld [vmem:[#allocation7 + $0x20] sm:$0xff]  ;;  %v441_v16 = vld [vmem:[#allocation5 + $0x50] sm:$0xff] }
  0x14   :  { %221 = vmatpush.bf16.msra.mxu1 %v445_v3  ;;  %v450_v17 = vld [vmem:[#allocation7 + $0x18] sm:$0xff]  ;;  %v432_v18 = vld [vmem:[#allocation5 + $0x8] sm:$0xff]  ;;  %v449_v20 = vld [vmem:[#allocation7 + $0x10] sm:$0xff] }
  0x15   :  { %v440_v19 = vld [vmem:[#allocation5 + $0x48] sm:$0xff]  ;;  %v431_v21 = vld [vmem:[#allocation5] sm:$0xff]  ;;  %v461_v29 = vld [vmem:[%s621_s2] ss:$0 sm:$0xff] }
  0x16   :  { %304 = vmatpush.bf16.msra.mxu2 %v453_v8  ;;  %v439_v22 = vld [vmem:[#allocation5 + $0x40] sm:$0xff]  ;;  %v448_v27 = vld [vmem:[#allocation7 + $0x8] sm:$0xff]  ;;  %v462_v38 = vld [vmem:[%s623_s4] ss:$0 sm:$0xff] }
  0x17   :  { %209 = vmatpush.bf16.msra.mxu0 %v436_v6  ;;  %v447_v28 = vld [vmem:[#allocation7] sm:$0xff] }
  0x18   :  { %222 = vmatpush.bf16.msra.mxu1 %v444_v7  ;;  %v69_v23 = vld.sshfl [vmem:[#allocation1] sm:$0xff pattern:$0x73625140]  ;;  %v70_v24 = vld.sshfl [vmem:[#allocation1 + $0x8] sm:$0xff pattern:$0x73625140] }
  0x19   :  { %v73_v25 = vpack.c.bf16 %v69_v23, %v69_v23  ;;  %v74_v26 = vpack.c.bf16 %v70_v24, %v70_v24 }
  0x1a   :  { %305 = vmatpush.bf16.msra.mxu2 %v452_v11 }
  0x1b   :  { %210 = vmatpush.bf16.msra.mxu0 %v435_v9 }
  0x1c   :  { %223 = vmatpush.bf16.msra.mxu1 %v443_v10 }
  0x1e   :  { %306 = vmatpush.bf16.msra.mxu2 %v451_v14 }
  0x1f   :  { %211 = vmatpush.bf16.msra.mxu0 %v434_v12 }
  0x20   :  { %224 = vmatpush.bf16.msra.mxu1 %v442_v13 }
  0x22   :  { %307 = vmatpush.bf16.msra.mxu2 %v450_v17 }
  0x23   :  { %212 = vmatpush.bf16.msra.mxu0 %v433_v15 }
  0x24   :  { %225 = vmatpush.bf16.msra.mxu1 %v441_v16 }
  0x26   :  { %308 = vmatpush.bf16.msra.mxu2 %v449_v20 }
  0x27   :  { %213 = vmatpush.bf16.msra.mxu0 %v432_v18 }
  0x28   :  { %226 = vmatpush.bf16.msra.mxu1 %v440_v19 }
  0x2a   :  { %309 = vmatpush.bf16.msra.mxu2 %v448_v27 }
  0x2b   :  { %214 = vmatpush.bf16.msra.mxu0 %v431_v21 }
  0x2c   :  { %227 = vmatpush.bf16.msra.mxu1 %v439_v22 }
  0x2e   :  { %215 = vmatmul.bf16.vlgmr.msra.gmra.mxu0 %v73_v25  ;;  %310 = vmatpush.bf16.msra.mxu2 %v447_v28 }
  0x2f   :  { %228 = vmatmul.bf16.vlgmr.msra.gmra.mxu1 %v74_v26 }
  0xab   :  { %v216_v30 = vpop.f32.mrf.mxu0 }
  0xac   :  { %v229_v31 = vpop.f32.mrf.mxu1  ;;  %v217_v32 = vadd.f32 %v461_v29, %v216_v30 }
  0xae   :  { %v230_v33 = vadd.f32 %v229_v31, %v217_v32 }
  0xb0   :  { %v233_v34 = vmax.f32 %v230_v33, 0.0 }
  0xb2   :  { %v234_v35 = vpack.c.bf16 %v233_v34, %v233_v34 }
  0xb3   :  { %v218_v36 = vpop.f32.mrf.mxu0 }
  0xb4   :  { %v231_v37 = vpop.f32.mrf.mxu1  ;;  %311 = vmatmul.bf16.vlgmr.msra.gmra.mxu2 %v234_v35 }
 0x137   :  { %v312_v39 = vpop.f32.mrf.mxu2 }
 0x138   :  { %v313_v40 = vadd.f32 %v462_v38, %v312_v39 }
 0x13a   :  { %316 = vst [vmem:[#allocation8] sm:$0x3] %v313_v40 }
 0x13b   :  { %327 = dma.vmem_to_hbm [thread:$0]  %s323_s12, 32, %s325_s15, [#allocation4]  }
 0x13f   :  { %v314_v41 = vpop.f32.mrf.mxu2 }
 0x140   :  { %563 = dma.done.wait [#allocation4], 32  }
 0x141   :  { %564 = vsyncadd [#allocation4], 4294967264 }
 0x142   :  { %332 = vsyncpa [#allocation3], 1 }
 0x143   :  { %333 = vsyncpa [#allocation6], 1 }
 0x144   :  { %334 = vsyncpa [#allocation4], 1 }

</bundles_post_ra>
